<compile_context>
chip_gen: v5e
topology: v5e:2x2
jax: 0.10.0
libtpu: 0.0.40
codegen_flags: <defaults>
</compile_context>

<pallas_src>
import jax
import jax.numpy as jnp
from jax.experimental import pallas as pl
from jax.experimental.pallas import tpu as pltpu


_SQRT_HALF = 0.7071067811865476


def _erf(z):
    """Abramowitz & Stegun 7.1.26 polynomial erf, |error| < ~1.5e-7 (f32)."""
    a1, a2, a3, a4, a5 = (0.254829592, -0.284496736, 1.421413741,
                          -1.453152027, 1.061405429)
    p = 0.3275911
    a = jnp.abs(z)
    # EUP reciprocal: keeps the divide off the VALU slot (free next to MXU).
    t = pl.reciprocal(1.0 + p * a, approx=True)
    poly = ((((a5 * t + a4) * t + a3) * t + a2) * t + a1) * t
    e = 1.0 - poly * jnp.exp(-a * a)
    return jnp.where(z < 0.0, -e, e)


def _gelu_erf(x):
    """erf-based GELU (matches torch.nn.GELU() default)."""
    return 0.5 * x * (1.0 + _erf(x * _SQRT_HALF))


def residual_ffn_kernel(x_ref, w1_ref, b1_ref, w2_ref, b2_ref, o_ref, acc_ref):
    # grid = (row_tiles, h_tiles); axis 1 is the H reduction ("arbitrary").
    k = pl.program_id(1)

    @pl.when(k == 0)
    def _init():
        # Fold the residual connection and the second bias into the init:
        # acc = x + b2  (epilogue is then just a cast + store).
        acc_ref[...] = (x_ref[...].astype(jnp.float32)
                        + b2_ref[...].astype(jnp.float32))

    # Matmul 1: native-dtype operands on the MXU, f32 accumulation.
    h = jnp.dot(x_ref[...], w1_ref[...], preferred_element_type=jnp.float32)
    h = _gelu_erf(h + b1_ref[...].astype(jnp.float32))
    # Matmul 2: cast activations back to the weight dtype (bf16 MXU path).
    acc_ref[...] += jnp.dot(h.astype(w2_ref.dtype), w2_ref[...],
                            preferred_element_type=jnp.float32)

    @pl.when(k == pl.num_programs(1) - 1)
    def _finalize():
        o_ref[...] = acc_ref[...].astype(o_ref.dtype)


def _round_up(x, m):
    return (x + m - 1) // m * m


def _cdiv(a, b):
    return (a + b - 1) // b


def _tpu_generation():
    try:
        kind = jax.devices()[0].device_kind.lower()
    except Exception:
        return "other"
    if "v5e" in kind or "v5 lite" in kind or "v5lite" in kind:
        return "v5e"
    if "v6" in kind:
        return "v6e"
    if "v7" in kind or "7x" in kind:
        return "v7x"
    return "other"


def _vmem_capacity_bytes(gen):
    try:
        cap = int(pltpu.get_tpu_info().vmem_capacity_bytes)
        if cap > 0:
            return cap
    except Exception:
        pass
    return (64 if gen == "v7x" else 128) * 1024 * 1024


# (D/H lane alignment, streaming row tile, weight-resident row tile, H chunk)
_GEN_CFG = {
    "v5e":   dict(lane=128, tm_stream=512,  tm_resident=512, tk=512),
    "v6e":   dict(lane=256, tm_stream=1024, tm_resident=512, tk=512),
    "v7x":   dict(lane=256, tm_stream=768,  tm_resident=256, tk=512),
    "other": dict(lane=128, tm_stream=512,  tm_resident=512, tk=512),
}


def residual_ffn(x, w1, b1, w2, b2, *, row_tile=None, h_tile=None):
    """fn(x) + x with fn = Linear(D->H) -> GELU(erf) -> Linear(H->D).

    x: [B, S, D]; w1: [D, H]; b1: [H]; w2: [H, D]; b2: [D].
    Rows/D/H are zero-padded to TPU-friendly multiples; result is un-padded.
    """
    B, S, D = x.shape
    H = w1.shape[1]
    M = B * S
    dtype = x.dtype
    x_it = jnp.dtype(dtype).itemsize
    w_it = jnp.dtype(w1.dtype).itemsize

    gen = _tpu_generation()
    cfg = _GEN_CFG.get(gen, _GEN_CFG["other"])
    vmem_cap = _vmem_capacity_bytes(gen)
    tile_budget = int(0.70 * vmem_cap)      # explicit buffers; rest is headroom
    vmem_limit = int(0.875 * vmem_cap)      # ~112 MiB on v5e/v6e, ~56 MiB on v7x

    lane = cfg["lane"]
    row_align = max(8, 32 // x_it)          # 8 (f32) / 16 (bf16) sublanes

    # ---- lane-dim padding ----------------------------------------------------
    D_p = _round_up(D, 128)
    if lane == 256 and D > 128 and D_p % 256 != 0:
        D_p = _round_up(D, 256)             # full-width tiles on 256-wide MXUs
    H_p0 = _round_up(H, lane)

    def clamp_tm(t):
        t = min(_round_up(t, row_align), _round_up(M, row_align))
        if gen == "v7x" and M > row_align:
            # Keep >= 2 row tiles so the "parallel" axis feeds both TensorCores.
            t = min(t, _round_up(_cdiv(M, 2), row_align))
        return max(t, row_align)

    def streamed_bytes(tm, tk):
        return (4 * tm * D_p * x_it             # x + out tiles (double-buffered)
                + tm * D_p * 4                  # f32 accumulator scratch
                + 4 * tk * D_p * w_it           # W1 + W2 H-chunks (double-buffered)
                + 2 * (tk + D_p) * w_it         # b1 chunk + b2
                + 3 * tm * tk * 4)              # (tm, tk) f32 GELU intermediates

    def resident_bytes(tm):
        return (4 * tm * D_p * x_it
                + tm * D_p * 4
                + 4 * D_p * H_p0 * w_it         # full W1 + W2 (2 buffers each)
                + 2 * (H_p0 + D_p) * w_it
                + 3 * tm * H_p0 * 4)            # (tm, H) f32 GELU intermediates

    tm_res = clamp_tm(row_tile if row_tile is not None else cfg["tm_resident"])
    if resident_bytes(tm_res) <= tile_budget:
        # Weight-resident fast path: single H step => grid-invariant weight
        # BlockSpecs => W1/W2/b1 are DMA'd from HBM exactly once per kernel.
        tm, tk, H_p = tm_res, H_p0, H_p0
    else:
        # Streaming path: large row tile (weight-bandwidth roofline), H chunked.
        tm = clamp_tm(row_tile if row_tile is not None else cfg["tm_stream"])
        tk = min(_round_up(h_tile if h_tile is not None else cfg["tk"], lane),
                 H_p0)
        while streamed_bytes(tm, tk) > tile_budget and tk > lane:
            tk = max(lane, (tk // 2) // lane * lane)
        while streamed_bytes(tm, tk) > tile_budget and tm > row_align:
            tm = max(row_align, _round_up(tm // 2, row_align))
        H_p = _round_up(H_p0, tk)           # pad H so tk divides it exactly
    # TODO(synk): on v7x with very large D_p (>= ~4K) a second "parallel"
    # output-column grid axis would keep tm large instead of the shrink loop.

    M_p = _round_up(M, tm)
    n_rows = M_p // tm
    n_h = H_p // tk

    x2d = x.reshape(M, D)
    if (M_p, D_p) != (M, D):
        x2d = jnp.pad(x2d, ((0, M_p - M), (0, D_p - D)))
    w1_p = jnp.pad(w1, ((0, D_p - D), (0, H_p - H)))
    w2_p = jnp.pad(w2, ((0, H_p - H), (0, D_p - D)))
    b1_p = jnp.pad(b1, (0, H_p - H)).reshape(1, H_p)
    b2_p = jnp.pad(b2, (0, D_p - D)).reshape(1, D_p)

    out2d = pl.pallas_call(
        residual_ffn_kernel,
        out_shape=jax.ShapeDtypeStruct((M_p, D_p), dtype),
        grid_spec=pltpu.PrefetchScalarGridSpec(
            num_scalar_prefetch=0,
            grid=(n_rows, n_h),                         # rows parallel, H last
            in_specs=[
                pl.BlockSpec((tm, D_p), lambda i, k: (i, 0)),   # x rows (resident over k)
                pl.BlockSpec((D_p, tk), lambda i, k: (0, k)),   # W1 H-chunk
                pl.BlockSpec((1, tk), lambda i, k: (0, k)),     # b1 chunk
                pl.BlockSpec((tk, D_p), lambda i, k: (k, 0)),   # W2 H-chunk
                pl.BlockSpec((1, D_p), lambda i, k: (0, 0)),    # b2 (grid-invariant)
            ],
            out_specs=pl.BlockSpec((tm, D_p), lambda i, k: (i, 0)),
            scratch_shapes=[pltpu.VMEM((tm, D_p), jnp.float32)],
        ),
        compiler_params=pltpu.CompilerParams(
            dimension_semantics=("parallel", "arbitrary"),
            vmem_limit_bytes=vmem_limit,
        ),
    )(x2d, w1_p, b1_p, w2_p, b2_p)

    return out2d[:M, :D].reshape(B, S, D)


def reference(x, w1, b1, w2, b2):
    """Pure-JAX f32 reference: Linear -> GELU(erf, torch default) -> Linear, + x."""
    xf = x.astype(jnp.float32)
    h = jax.nn.gelu(xf @ w1.astype(jnp.float32) + b1.astype(jnp.float32),
                    approximate=False)
    return h @ w2.astype(jnp.float32) + b2.astype(jnp.float32) + xf


if __name__ == "__main__":
    # Small demo shapes; the wrapper zero-pads unaligned rows / D / H, so any
    # B*S / D / H is accepted.
    B, S, D, H = 2, 8, 128, 256
    dtype = jnp.bfloat16   # native bf16 operands -> bf16 MXU path, f32 accumulate

    key = jax.random.PRNGKey(0)
    kx, k1, k2, k3, k4 = jax.random.split(key, 5)

    x = jax.random.normal(kx, (B, S, D), dtype=jnp.float32).astype(dtype)
    w1 = (jax.random.normal(k1, (D, H), dtype=jnp.float32) * 0.02).astype(dtype)
    b1 = (jax.random.normal(k2, (H,), dtype=jnp.float32) * 0.02).astype(dtype)
    w2 = (jax.random.normal(k3, (H, D), dtype=jnp.float32) * 0.02).astype(dtype)
    b2 = (jax.random.normal(k4, (D,), dtype=jnp.float32) * 0.02).astype(dtype)

    out = residual_ffn(x, w1, b1, w2, b2)
    out = jax.block_until_ready(out)

    ref = reference(x, w1, b1, w2, b2)
    assert out.shape == x.shape
    # bf16 storage/compute vs f32 reference -> bf16-level tolerance.
    assert jnp.allclose(out.astype(jnp.float32), ref, atol=2e-2, rtol=2e-2), (
        f"mismatch vs reference: max |err| = "
        f"{jnp.max(jnp.abs(out.astype(jnp.float32) - ref))}")

    print("KERNEL_OK")
</pallas_src>

<mosaic_0001>
module attributes {stable_mosaic.version = 11 : i64} {
  func.func @residual_ffn_kernel(%arg0: i32, %arg1: i32, %arg2: memref<16x128xbf16, #tpu.memory_space<vmem>>, %arg3: memref<128x256xbf16, #tpu.memory_space<vmem>>, %arg4: memref<1x256xbf16, #tpu.memory_space<vmem>>, %arg5: memref<256x128xbf16, #tpu.memory_space<vmem>>, %arg6: memref<1x128xbf16, #tpu.memory_space<vmem>>, %arg7: memref<16x128xbf16, #tpu.memory_space<vmem>>, %arg8: memref<16x128xf32, #tpu.memory_space<vmem>>) attributes {dimension_semantics = [#tpu.dimension_semantics<parallel>, #tpu.dimension_semantics<arbitrary>], iteration_bounds = array<i64: 1, 1>, scalar_prefetch = 0 : i64, scratch_operands = 1 : i64, tpu.core_type = #tpu.core_type<tc>, window_params = [{transform_indices = @transform_0, window_bounds = array<i64: 16, 128>}, {transform_indices = @transform_1, window_bounds = array<i64: 128, 256>}, {transform_indices = @transform_2, window_bounds = array<i64: 1, 256>}, {transform_indices = @transform_3, window_bounds = array<i64: 256, 128>}, {pipeline_mode = #tpu.pipeline_mode<synchronous>, transform_indices = @transform_4, window_bounds = array<i64: 1, 128>}, {transform_indices = @transform_5, window_bounds = array<i64: 16, 128>}]} {
    %c0_i32 = arith.constant 0 : i32
    %0 = arith.cmpi eq, %arg1, %c0_i32 : i32
    %1 = arith.extui %0 : i1 to i32
    %c0_i32_0 = arith.constant 0 : i32
    %2 = arith.cmpi ne, %1, %c0_i32_0 : i32
    scf.if %2 {
      %c0_29 = arith.constant 0 : index
      %c0_30 = arith.constant 0 : index
      %58 = vector.load %arg2[%c0_29, %c0_30] : memref<16x128xbf16, #tpu.memory_space<vmem>>, vector<16x128xbf16>
      %59 = arith.extf %58 : vector<16x128xbf16> to vector<16x128xf32>
      %c0_31 = arith.constant 0 : index
      %c0_32 = arith.constant 0 : index
      %60 = vector.load %arg6[%c0_31, %c0_32] : memref<1x128xbf16, #tpu.memory_space<vmem>>, vector<1x128xbf16>
      %61 = arith.extf %60 : vector<1x128xbf16> to vector<1x128xf32>
      %62 = vector.broadcast %61 : vector<1x128xf32> to vector<16x128xf32>
      %63 = arith.addf %59, %62 : vector<16x128xf32>
      %c0_33 = arith.constant 0 : index
      %c0_34 = arith.constant 0 : index
      %64 = vector.load %arg8[%c0_33, %c0_34] : memref<16x128xf32, #tpu.memory_space<vmem>>, vector<16x128xf32>
      tpu.vector_store %arg8[%c0_33, %c0_34], %63 {strides = array<i32>} : memref<16x128xf32, #tpu.memory_space<vmem>>, vector<16x128xf32>,
    } else {
    }
    %c0 = arith.constant 0 : index
    %c0_1 = arith.constant 0 : index
    %3 = vector.load %arg2[%c0, %c0_1] : memref<16x128xbf16, #tpu.memory_space<vmem>>, vector<16x128xbf16>
    %c0_2 = arith.constant 0 : index
    %c0_3 = arith.constant 0 : index
    %4 = vector.load %arg3[%c0_2, %c0_3] : memref<128x256xbf16, #tpu.memory_space<vmem>>, vector<128x256xbf16>
    %cst = arith.constant dense<0.000000e+00> : vector<16x256xf32>
    %5 = tpu.matmul %3, %4, %cst {dimension_numbers = #tpu.dot_dimension_numbers<[1], [0], [0], [1], [0, 0, 1, 1], [], []>} : vector<16x128xbf16>, vector<128x256xbf16>, vector<16x256xf32> -> vector<16x256xf32>
    %c0_4 = arith.constant 0 : index
    %c0_5 = arith.constant 0 : index
    %6 = vector.load %arg4[%c0_4, %c0_5] : memref<1x256xbf16, #tpu.memory_space<vmem>>, vector<1x256xbf16>
    %7 = arith.extf %6 : vector<1x256xbf16> to vector<1x256xf32>
    %8 = vector.broadcast %7 : vector<1x256xf32> to vector<16x256xf32>
    %9 = arith.addf %5, %8 : vector<16x256xf32>
    %cst_6 = arith.constant 5.000000e-01 : f32
    %10 = vector.broadcast %cst_6 : f32 to vector<16x256xf32>
    %11 = arith.mulf %10, %9 : vector<16x256xf32>
    %cst_7 = arith.constant 0.707106769 : f32
    %12 = vector.broadcast %cst_7 : f32 to vector<16x256xf32>
    %13 = arith.mulf %9, %12 : vector<16x256xf32>
    %14 = math.absf %13 : vector<16x256xf32>
    %cst_8 = arith.constant 0.327591091 : f32
    %15 = vector.broadcast %cst_8 : f32 to vector<16x256xf32>
    %16 = arith.mulf %15, %14 : vector<16x256xf32>
    %cst_9 = arith.constant 1.000000e+00 : f32
    %17 = vector.broadcast %cst_9 : f32 to vector<16x256xf32>
    %18 = arith.addf %17, %16 : vector<16x256xf32>
    %19 = tpu.reciprocal %18 {approx = true} : vector<16x256xf32> -> vector<16x256xf32>
    %cst_10 = arith.constant 1.06140542 : f32
    %20 = vector.broadcast %cst_10 : f32 to vector<16x256xf32>
    %21 = arith.mulf %20, %19 : vector<16x256xf32>
    %cst_11 = arith.constant -1.45315206 : f32
    %22 = vector.broadcast %cst_11 : f32 to vector<16x256xf32>
    %23 = arith.addf %21, %22 : vector<16x256xf32>
    %24 = arith.mulf %23, %19 : vector<16x256xf32>
    %cst_12 = arith.constant 1.42141378 : f32
    %25 = vector.broadcast %cst_12 : f32 to vector<16x256xf32>
    %26 = arith.addf %24, %25 : vector<16x256xf32>
    %27 = arith.mulf %26, %19 : vector<16x256xf32>
    %cst_13 = arith.constant -0.284496725 : f32
    %28 = vector.broadcast %cst_13 : f32 to vector<16x256xf32>
    %29 = arith.addf %27, %28 : vector<16x256xf32>
    %30 = arith.mulf %29, %19 : vector<16x256xf32>
    %cst_14 = arith.constant 0.254829586 : f32
    %31 = vector.broadcast %cst_14 : f32 to vector<16x256xf32>
    %32 = arith.addf %30, %31 : vector<16x256xf32>
    %33 = arith.mulf %32, %19 : vector<16x256xf32>
    %cst_15 = arith.constant 0.000000e+00 : f32
    %34 = vector.broadcast %cst_15 : f32 to vector<16x256xf32>
    %35 = arith.subf %34, %14 : vector<16x256xf32>
    %36 = arith.mulf %35, %14 : vector<16x256xf32>
    %37 = math.exp %36 : vector<16x256xf32>
    %38 = arith.mulf %33, %37 : vector<16x256xf32>
    %cst_16 = arith.constant 1.000000e+00 : f32
    %39 = vector.broadcast %cst_16 : f32 to vector<16x256xf32>
    %40 = arith.subf %39, %38 : vector<16x256xf32>
    %cst_17 = arith.constant 0.000000e+00 : f32
    %41 = vector.broadcast %cst_17 : f32 to vector<16x256xf32>
    %42 = arith.cmpf olt, %13, %41 : vector<16x256xf32>
    %cst_18 = arith.constant 0.000000e+00 : f32
    %43 = vector.broadcast %cst_18 : f32 to vector<16x256xf32>
    %44 = arith.subf %43, %40 : vector<16x256xf32>
    %45 = arith.select %42, %44, %40 : vector<16x256xi1>, vector<16x256xf32>
    %cst_19 = arith.constant 1.000000e+00 : f32
    %46 = vector.broadcast %cst_19 : f32 to vector<16x256xf32>
    %47 = arith.addf %46, %45 : vector<16x256xf32>
    %48 = arith.mulf %11, %47 : vector<16x256xf32>
    %c0_20 = arith.constant 0 : index
    %c0_21 = arith.constant 0 : index
    %49 = vector.load %arg8[%c0_20, %c0_21] : memref<16x128xf32, #tpu.memory_space<vmem>>, vector<16x128xf32>
    %50 = arith.truncf %48 : vector<16x256xf32> to vector<16x256xbf16>
    %c0_22 = arith.constant 0 : index
    %c0_23 = arith.constant 0 : index
    %51 = vector.load %arg5[%c0_22, %c0_23] : memref<256x128xbf16, #tpu.memory_space<vmem>>, vector<256x128xbf16>
    %cst_24 = arith.constant dense<0.000000e+00> : vector<16x128xf32>
    %52 = tpu.matmul %50, %51, %cst_24 {dimension_numbers = #tpu.dot_dimension_numbers<[1], [0], [0], [1], [0, 0, 1, 1], [], []>} : vector<16x256xbf16>, vector<256x128xbf16>, vector<16x128xf32> -> vector<16x128xf32>
    %53 = arith.addf %49, %52 : vector<16x128xf32>
    %c0_25 = arith.constant 0 : index
    %c0_26 = arith.constant 0 : index
    %54 = vector.load %arg8[%c0_25, %c0_26] : memref<16x128xf32, #tpu.memory_space<vmem>>, vector<16x128xf32>
    tpu.vector_store %arg8[%c0_25, %c0_26], %53 {strides = array<i32>} : memref<16x128xf32, #tpu.memory_space<vmem>>, vector<16x128xf32>,
    %c0_i32_27 = arith.constant 0 : i32
    %55 = arith.cmpi eq, %arg1, %c0_i32_27 : i32
    %56 = arith.extui %55 : i1 to i32
    %c0_i32_28 = arith.constant 0 : i32
    %57 = arith.cmpi ne, %56, %c0_i32_28 : i32
    scf.if %57 {
      %c0_29 = arith.constant 0 : index
      %c0_30 = arith.constant 0 : index
      %58 = vector.load %arg8[%c0_29, %c0_30] : memref<16x128xf32, #tpu.memory_space<vmem>>, vector<16x128xf32>
      %59 = arith.truncf %58 : vector<16x128xf32> to vector<16x128xbf16>
      %c0_31 = arith.constant 0 : index
      %c0_32 = arith.constant 0 : index
      %60 = vector.load %arg7[%c0_31, %c0_32] : memref<16x128xbf16, #tpu.memory_space<vmem>>, vector<16x128xbf16>
      tpu.vector_store %arg7[%c0_31, %c0_32], %59 {strides = array<i32>} : memref<16x128xbf16, #tpu.memory_space<vmem>>, vector<16x128xbf16>,
    } else {
    }
    return
  }
  func.func @transform_0(%arg0: i32, %arg1: i32) -> (i32, i32) {
    %c0_i32 = arith.constant 0 : i32
    %c0_i32_0 = arith.constant 0 : i32
    return %arg0, %c0_i32 : i32, i32
  }
  func.func @transform_1(%arg0: i32, %arg1: i32) -> (i32, i32) {
    %c0_i32 = arith.constant 0 : i32
    %c0_i32_0 = arith.constant 0 : i32
    return %c0_i32, %arg1 : i32, i32
  }
  func.func @transform_2(%arg0: i32, %arg1: i32) -> (i32, i32) {
    %c0_i32 = arith.constant 0 : i32
    %c0_i32_0 = arith.constant 0 : i32
    return %c0_i32, %arg1 : i32, i32
  }
  func.func @transform_3(%arg0: i32, %arg1: i32) -> (i32, i32) {
    %c0_i32 = arith.constant 0 : i32
    %c0_i32_0 = arith.constant 0 : i32
    return %arg1, %c0_i32 : i32, i32
  }
  func.func @transform_4(%arg0: i32, %arg1: i32) -> (i32, i32) {
    %c0_i32 = arith.constant 0 : i32
    %c0_i32_0 = arith.constant 0 : i32
    %c0_i32_1 = arith.constant 0 : i32
    return %c0_i32, %c0_i32_0 : i32, i32
  }
  func.func @transform_5(%arg0: i32, %arg1: i32) -> (i32, i32) {
    %c0_i32 = arith.constant 0 : i32
    %c0_i32_0 = arith.constant 0 : i32
    return %arg0, %c0_i32 : i32, i32
  }
}

</mosaic_0001>

<bundles_post_ra>
// kernel: tpu_custom_call.1
= control target key start
LH: loop header
LB: loop body
LE: loop exit
PB: predicated region body
PF: predicated region fallthrough
CT: control target
= control target key end

     0   :  { %10 = vsyncpa [#allocation4], 0  ;;  %s961_s0 = inlined_call_operand.hbm [shape: bf16[16,128], index: 0, kind: input, shape index: {}]   ;;  %s962_s1 = inlined_call_operand.hbm [shape: bf16[128,256], index: 1, kind: input, shape index: {}]   ;;  %s963_s2 = inlined_call_operand.hbm [shape: bf16[1,256], index: 2, kind: input, shape index: {}]   ;;  %s964_s3 = inlined_call_operand.hbm [shape: bf16[256,128], index: 3, kind: input, shape index: {}]   ;;  %s965_s4 = inlined_call_operand.vmem [shape: bf16[1,128], index: 4, kind: input, shape index: {}]   ;;  %s966_s5 = inlined_call_operand.hbm [shape: bf16[16,128], index: 5, kind: output, shape index: {}]  }
   0x1   :  { %11 = vsyncpa [#allocation7], 0 }
   0x2   :  { %12 = vsyncpa [#allocation10], 0  ;;  %s31_s20 = sshll.u32 %s962_s1, 4  ;;  %s32_s20 = int_to_ptr.hbm [resolvable:$true] %s31_s20 }
   0x3   :  { %13 = vsyncpa [#allocation5], 0  ;;  %s863_s21 = smov [#allocation6]   ;;  %s18_s25 = sshll.u32 %s961_s0, 4  ;;  %s19_s25 = int_to_ptr.hbm [resolvable:$true] %s18_s25 }
   0x4   :  { %s33_s22 = sshll.u32 %s863_s21, 4  ;;  %s864_s26 = smov 128   ;;  %s34_s22 = int_to_ptr.vmem [resolvable:$true] %s33_s22 }
   0x5   :  { %s865_s27 = smov 8   ;;  %s866_s28 = smov [#allocation3]  }
   0x6   :  { %39 = dma.hbm_to_vmem [thread:$0]  %s32_s20, 2048, %s34_s22, [#allocation7], %s864_s26, %s864_s26, %s865_s27  }
   0x7   :  { %s20_s29 = sshll.u32 %s866_s28, 4  ;;  %s867_s30 = smov 64   ;;  %s21_s29 = int_to_ptr.vmem [resolvable:$true] %s20_s29 }
   0x8   :  { %s868_s6 = smov 4   ;;  %s45_s8 = sshll.u32 %s963_s2, 4  ;;  %s46_s8 = int_to_ptr.hbm [resolvable:$true] %s45_s8 }
   0x9   :  { %26 = dma.hbm_to_vmem [thread:$0]  %s19_s25, 128, %s21_s29, [#allocation4], %s867_s30, %s867_s30, %s868_s6  }
   0xa   :  { %s869_s9 = smov [#allocation8]   ;;  %s55_s12 = sshll.u32 %s964_s3, 4  ;;  %s56_s12 = int_to_ptr.hbm [resolvable:$true] %s55_s12 }
   0xb   :  { %s47_s0 = sshll.u32 %s869_s9, 4  ;;  %s870_s13 = smov [#allocation9]   ;;  %s48_s0 = int_to_ptr.vmem [resolvable:$true] %s47_s0 }
   0xc   :  { %50 = dma.hbm_to_vmem [thread:$0]  %s46_s8, 32, %s48_s0, [#allocation7]  }
   0xd   :  { %s57_s14 = sshll.u32 %s870_s13, 4  ;;  %s58_s14 = int_to_ptr.vmem [resolvable:$true] %s57_s14 }
   0xe   :  { %63 = dma.hbm_to_vmem [thread:$0]  %s56_s12, 2048, %s58_s14, [#allocation10], %s867_s30, %s867_s30, %s868_s6  }
   0xf   :  { %855 = dma.done.wait [#allocation4], 128  }
  0x10   :  { %856 = vsyncadd [#allocation4], 4294967168 }
  0x11   :  { %857 = dma.done.wait [#allocation7], 2080  }
  0x12   :  { %858 = vsyncadd [#allocation7], 4294965216 }
  0x13   :  { %859 = dma.done.wait [#allocation10], 2048  }
  0x14   :  { %860 = vsyncadd [#allocation10], 4294965248  ;;  %v598_v0 = vld [vmem:[#allocation6 + $0x70] sm:$0xf]  ;;  %v684_v1 = vld [vmem:[#allocation6 + $0x74] sm:$0xf0] }
  0x15   :  { %v683_v2 = vld [vmem:[#allocation6 + $0x74] sm:$0xf]  ;;  %v599_v3 = vor.u32 %v684_v1, %v598_v0  ;;  %v600_v4 = vld [vmem:[#allocation6 + $0x78] sm:$0xf0]  ;;  %v590_v5 = vld [vmem:[#allocation6 + $0x60] sm:$0xf] }
  0x16   :  { %v682_v6 = vld [vmem:[#allocation6 + $0x64] sm:$0xf0]  ;;  %v603_v7 = vor.u32 %v683_v2, %v600_v4  ;;  %v681_v8 = vld [vmem:[#allocation6 + $0x64] sm:$0xf]  ;;  %v592_v9 = vld [vmem:[#allocation6 + $0x68] sm:$0xf0] }
  0x17   :  { %210 = vmatpush.bf16.msra.mxu0 %v599_v3  ;;  %v591_v10 = vor.u32 %v682_v6, %v590_v5  ;;  %v595_v11 = vor.u32 %v681_v8, %v592_v9  ;;  %v582_v12 = vld [vmem:[#allocation6 + $0x50] sm:$0xf]  ;;  %v680_v13 = vld [vmem:[#allocation6 + $0x54] sm:$0xf0]  ;;  %v679_v14 = vld [vmem:[#allocation6 + $0x54] sm:$0xf] }
  0x18   :  { %224 = vmatpush.bf16.msra.mxu1 %v603_v7  ;;  %v584_v15 = vld [vmem:[#allocation6 + $0x58] sm:$0xf0]  ;;  %v583_v16 = vor.u32 %v680_v13, %v582_v12  ;;  %v574_v18 = vld [vmem:[#allocation6 + $0x40] sm:$0xf]  ;;  %v678_v19 = vld [vmem:[#allocation6 + $0x44] sm:$0xf0] }
  0x19   :  { %v587_v17 = vor.u32 %v679_v14, %v584_v15  ;;  %v677_v20 = vld [vmem:[#allocation6 + $0x44] sm:$0xf]  ;;  %v576_v21 = vld [vmem:[#allocation6 + $0x48] sm:$0xf0]  ;;  %v575_v22 = vor.u32 %v678_v19, %v574_v18  ;;  %v566_v24 = vld [vmem:[#allocation6 + $0x30] sm:$0xf] }
  0x1a   :  { %v579_v23 = vor.u32 %v677_v20, %v576_v21  ;;  %v676_v25 = vld [vmem:[#allocation6 + $0x34] sm:$0xf0]  ;;  %v675_v26 = vld [vmem:[#allocation6 + $0x34] sm:$0xf]  ;;  %v568_v27 = vld [vmem:[#allocation6 + $0x38] sm:$0xf0] }
  0x1b   :  { %211 = vmatpush.bf16.msra.mxu0 %v591_v10  ;;  %v567_v28 = vor.u32 %v676_v25, %v566_v24  ;;  %v571_v29 = vor.u32 %v675_v26, %v568_v27  ;;  %v558_v30 = vld [vmem:[#allocation6 + $0x20] sm:$0xf]  ;;  %v674_v31 = vld [vmem:[#allocation6 + $0x24] sm:$0xf0]  ;;  %v673_v32 = vld [vmem:[#allocation6 + $0x24] sm:$0xf] }
  0x1c   :  { %225 = vmatpush.bf16.msra.mxu1 %v595_v11  ;;  %v560_v33 = vld [vmem:[#allocation6 + $0x28] sm:$0xf0]  ;;  %v559_v34 = vor.u32 %v674_v31, %v558_v30  ;;  %v550_v36 = vld [vmem:[#allocation6 + $0x10] sm:$0xf]  ;;  %v672_v37 = vld [vmem:[#allocation6 + $0x14] sm:$0xf0] }
  0x1d   :  { %v563_v35 = vor.u32 %v673_v32, %v560_v33  ;;  %v671_v38 = vld [vmem:[#allocation6 + $0x14] sm:$0xf]  ;;  %v552_v39 = vld [vmem:[#allocation6 + $0x18] sm:$0xf0]  ;;  %v551_v40 = vor.u32 %v672_v37, %v550_v36  ;;  %v542_v42 = vld [vmem:[#allocation6] sm:$0xf] }
  0x1e   :  { %v555_v41 = vor.u32 %v671_v38, %v552_v39  ;;  %v670_v43 = vld [vmem:[#allocation6 + $0x4] sm:$0xf0]  ;;  %v669_v44 = vld [vmem:[#allocation6 + $0x4] sm:$0xf]  ;;  %v544_v45 = vld [vmem:[#allocation6 + $0x8] sm:$0xf0] }
  0x1f   :  { %212 = vmatpush.bf16.msra.mxu0 %v583_v16  ;;  %v543_v46 = vor.u32 %v670_v43, %v542_v42  ;;  %v547_v47 = vor.u32 %v669_v44, %v544_v45  ;;  %v668_v48 = vld [vmem:[#allocation3] sm:$0xff]  ;;  %v115_v49 = vld [vmem:[#allocation8] sm:$0x3]  ;;  %v690_v57 = vld [vmem:[#allocation9 + $0x28] sm:$0xff]  ;;  %s871_s15 = smov [#allocation11]   ;;  %s521_s19 = sshll.u32 %s966_s5, 4  ;;  %s522_s19 = int_to_ptr.hbm [resolvable:$true] %s521_s19 }
  0x20   :  { %226 = vmatpush.bf16.msra.mxu1 %v587_v17  ;;  %v116_v50 = vunpack.c.l.bf16 %v115_v49  ;;  %v692_v51 = vld [vmem:[#allocation9 + $0x38] sm:$0xff]  ;;  %v691_v53 = vld [vmem:[#allocation9 + $0x30] sm:$0xff]  ;;  %v698_v58 = vld [vmem:[#allocation9 + $0x68] sm:$0xff]  ;;  %s519_s16 = sshll.u32 %s871_s15, 4  ;;  %s520_s16 = int_to_ptr.vmem [resolvable:$true] %s519_s16 }
  0x21   :  { %v700_v52 = vld [vmem:[#allocation9 + $0x78] sm:$0xff]  ;;  %474 = vmatpush.bf16.msra.mxu2 %v692_v51  ;;  %v699_v54 = vld [vmem:[#allocation9 + $0x70] sm:$0xff]  ;;  %v689_v62 = vld [vmem:[#allocation9 + $0x20] sm:$0xff] }
  0x22   :  { %488 = vmatpush.bf16.msra.mxu3 %v700_v52  ;;  %v118_v55 = vperm.slane %v116_v50, 0  ;;  %v119_v56 = vperm.slane %v116_v50, 2  ;;  %v697_v63 = vld [vmem:[#allocation9 + $0x60] sm:$0xff]  ;;  %v688_v5 = vld [vmem:[#allocation9 + $0x18] sm:$0xff]  ;;  %v687_v12 = vld [vmem:[#allocation9 + $0x10] sm:$0xff] }
  0x23   :  { %213 = vmatpush.bf16.msra.mxu0 %v575_v22  ;;  %v696_v6 = vld [vmem:[#allocation9 + $0x58] sm:$0xff]  ;;  %v695_v13 = vld [vmem:[#allocation9 + $0x50] sm:$0xff]  ;;  %v686_v21 = vld [vmem:[#allocation9 + $0x8] sm:$0xff] }
  0x24   :  { %227 = vmatpush.bf16.msra.mxu1 %v579_v23  ;;  %v122_v59 = vperm.slane %v118_v55, 0  ;;  %v123_v60 = vperm.slane %v119_v56, 0  ;;  %v694_v22 = vld [vmem:[#allocation9 + $0x48] sm:$0xff]  ;;  %v685_v27 = vld [vmem:[#allocation9] sm:$0xff] }
  0x25   :  { %475 = vmatpush.bf16.msra.mxu2 %v691_v53 }
  0x26   :  { %489 = vmatpush.bf16.msra.mxu3 %v699_v54 }
  0x27   :  { %214 = vmatpush.bf16.msra.mxu0 %v567_v28  ;;  %v693_v28 = vld [vmem:[#allocation9 + $0x40] sm:$0xff] }
  0x28   :  { %228 = vmatpush.bf16.msra.mxu1 %v571_v29 }
  0x29   :  { %476 = vmatpush.bf16.msra.mxu2 %v690_v57 }
  0x2a   :  { %490 = vmatpush.bf16.msra.mxu3 %v698_v58 }
  0x2b   :  { %215 = vmatpush.bf16.msra.mxu0 %v559_v34 }
  0x2c   :  { %229 = vmatpush.bf16.msra.mxu1 %v563_v35 }
  0x2d   :  { %477 = vmatpush.bf16.msra.mxu2 %v689_v62 }
  0x2e   :  { %491 = vmatpush.bf16.msra.mxu3 %v697_v63 }
  0x2f   :  { %216 = vmatpush.bf16.msra.mxu0 %v551_v40 }
  0x30   :  { %230 = vmatpush.bf16.msra.mxu1 %v555_v41 }
  0x31   :  { %478 = vmatpush.bf16.msra.mxu2 %v688_v5 }
  0x32   :  { %492 = vmatpush.bf16.msra.mxu3 %v696_v6 }
  0x33   :  { %217 = vmatpush.bf16.msra.mxu0 %v543_v46 }
  0x34   :  { %231 = vmatpush.bf16.msra.mxu1 %v547_v47 }
  0x35   :  { %479 = vmatpush.bf16.msra.mxu2 %v687_v12 }
  0x36   :  { %218 = vmatmul.bf16.vlgmr.msra.gmra.mxu0 %v668_v48  ;;  %493 = vmatpush.bf16.msra.mxu3 %v695_v13 }
  0x37   :  { %232 = vmatmul.bf16.vlgmr.msra.gmra.mxu1 %v668_v48 }
  0x39   :  { %480 = vmatpush.bf16.msra.mxu2 %v686_v21 }
  0x3a   :  { %494 = vmatpush.bf16.msra.mxu3 %v694_v22 }
  0x3d   :  { %481 = vmatpush.bf16.msra.mxu2 %v685_v27 }
  0x3e   :  { %495 = vmatpush.bf16.msra.mxu3 %v693_v28 }
  0xb3   :  { %v219_v61 = vpop.f32.mrf.mxu0 }
  0xb4   :  { %v920_v0 = vadd.f32 %v219_v61, %v122_v59  ;;  %v233_v1 = vpop.f32.mrf.mxu1 }
  0xb5   :  { %v922_v2 = vadd.f32 %v233_v1, %v123_v60 }
  0xb6   :  { %v925_v3 = vmul.f32 0.70710677, %v920_v0 }
  0xb7   :  { %v928_v4 = vmul.f32 0.70710677, %v922_v2 }
  0xb8   :  { %v246_v7 = vand.u32 2147483647, %v925_v3  ;;  %vm322_vm0 = vcmp.lt.f32.partialorder %v925_v3, 0.0 }
  0xb9   :  { %v247_v8 = vand.u32 2147483647, %v928_v4  ;;  %vm323_vm1 = vcmp.lt.f32.partialorder %v928_v4, 0.0  ;;  %v239_v4 = vmul.f32 0.5, %v922_v2 }
  0xba   :  { %v250_v9 = vmul.f32 0.3275911, %v246_v7  ;;  %v298_v30 = vsub.f32 0.0, %v246_v7 }
  0xbb   :  { %v251_v10 = vmul.f32 0.3275911, %v247_v8  ;;  %v221_v11 = vpop.f32.mrf.mxu0  ;;  %v299_v33 = vsub.f32 0.0, %v247_v8 }
  0xbc   :  { %v254_v14 = vadd.f32 1.0, %v250_v9  ;;  %v932_v15 = vadd.f32 %v221_v11, %v122_v59  ;;  %v235_v16 = vpop.f32.mrf.mxu1  ;;  %v302_v38 = vmul.f32 %v298_v30, %v246_v7 }
  0xbd   :  { %v255_v17 = vadd.f32 1.0, %v251_v10  ;;  %v934_v18 = vadd.f32 %v235_v16, %v123_v60  ;;  %v303_v40 = vmul.f32 %v299_v33, %v247_v8 }
  0xbe   :  { %719 = vrcp.f32 %v254_v14  ;;  %v937_v19 = vmul.f32 0.70710677, %v932_v15  ;;  %v306_v45 = vmul.f32 1.442695, %v302_v38  ;;  %v240_v3 = vmul.f32 0.5, %v932_v15 }
  0xbf   :  { %721 = vrcp.f32 %v255_v17  ;;  %v940_v20 = vmul.f32 0.70710677, %v934_v18  ;;  %v308_v49 = vmul.f32 1.442695, %v303_v40 }
  0xc0   :  { %v248_v23 = vand.u32 2147483647, %v937_v19  ;;  %vm324_vm2 = vcmp.lt.f32.partialorder %v937_v19, 0.0 }
  0xc1   :  { %v249_v24 = vand.u32 2147483647, %v940_v20  ;;  %vm325_vm3 = vcmp.lt.f32.partialorder %v940_v20, 0.0 }
  0xc2   :  { %v252_v25 = vmul.f32 0.3275911, %v248_v23  ;;  %v300_v46 = vsub.f32 0.0, %v248_v23 }
  0xc3   :  { %v253_v26 = vmul.f32 0.3275911, %v249_v24  ;;  %v301_v50 = vsub.f32 0.0, %v249_v24 }
  0xc4   :  { %v720_v29 = vpop.eup %719  ;;  %v256_v31 = vadd.f32 1.0, %v252_v25  ;;  %v304_v57 = vmul.f32 %v300_v46, %v248_v23 }
  0xc5   :  { %v722_v32 = vpop.eup %721  ;;  %v257_v34 = vadd.f32 1.0, %v253_v26  ;;  %v262_v35 = vmul.f32 1.0614054, %v720_v29  ;;  %v305_v60 = vmul.f32 %v301_v50, %v249_v24 }
  0xc6   :  { %723 = vrcp.f32 %v256_v31  ;;  %v263_v36 = vmul.f32 1.0614054, %v722_v32  ;;  %v310_v7 = vmul.f32 1.442695, %v304_v57 }
  0xc7   :  { %725 = vrcp.f32 %v257_v34  ;;  %v266_v37 = vadd.f32 -1.4531521, %v262_v35  ;;  %v312_v10 = vmul.f32 1.442695, %v305_v60 }
  0xc8   :  { %v267_v39 = vadd.f32 -1.4531521, %v263_v36  ;;  %727 = vpow2.f32 %v306_v45 }
  0xc9   :  { %v270_v41 = vmul.f32 %v720_v29, %v266_v37  ;;  %729 = vpow2.f32 %v308_v49 }
  0xca   :  { %v271_v42 = vmul.f32 %v722_v32, %v267_v39  ;;  %731 = vpow2.f32 %v310_v7 }
  0xcb   :  { %v274_v43 = vadd.f32 1.4214138, %v270_v41  ;;  %733 = vpow2.f32 %v312_v10 }
  0xcc   :  { %v724_v44 = vpop.eup %723  ;;  %v275_v47 = vadd.f32 1.4214138, %v271_v42 }
  0xcd   :  { %v726_v48 = vpop.eup %725  ;;  %v264_v51 = vmul.f32 1.0614054, %v724_v44  ;;  %v278_v52 = vmul.f32 %v720_v29, %v274_v43 }
  0xce   :  { %v265_v53 = vmul.f32 1.0614054, %v726_v48  ;;  %v279_v54 = vmul.f32 %v722_v32, %v275_v47  ;;  %v728_v13 = vpop.eup %727 }
  0xcf   :  { %v268_v55 = vadd.f32 -1.4531521, %v264_v51  ;;  %v282_v56 = vadd.f32 -0.28449672, %v278_v52  ;;  %v730_v17 = vpop.eup %729  ;;  %v241_v51 = vmul.f32 0.5, %v934_v18 }
  0xd0   :  { %v269_v58 = vadd.f32 -1.4531521, %v265_v53  ;;  %v283_v59 = vadd.f32 -0.28449672, %v279_v54  ;;  %v732_v35 = vpop.eup %731 }
  0xd1   :  { %v272_v61 = vmul.f32 %v724_v44, %v268_v55  ;;  %v286_v62 = vmul.f32 %v720_v29, %v282_v56  ;;  %v734_v37 = vpop.eup %733 }
  0xd2   :  { %v273_v63 = vmul.f32 %v726_v48, %v269_v58  ;;  %v287_v1 = vmul.f32 %v722_v32, %v283_v59  ;;  %v702_v58 = vld [vmem:[#allocation3] sm:$0xff]  }
  0xd3   :  { %v276_v5 = vadd.f32 1.4214138, %v272_v61  ;;  %v290_v6 = vadd.f32 0.2548296, %v286_v62  ;;  %v703_v2 = vunpack.c.l.bf16 %v702_v58  ;;  %v704_v18 = vunpack.c.h.bf16 %v702_v58 }
  0xd4   :  { %v277_v8 = vadd.f32 1.4214138, %v273_v63  ;;  %v291_v9 = vadd.f32 0.2548296, %v287_v1 }
  0xd5   :  { %v280_v11 = vmul.f32 %v724_v44, %v276_v5  ;;  %v294_v12 = vmul.f32 %v720_v29, %v290_v6 }
  0xd6   :  { %v281_v14 = vmul.f32 %v726_v48, %v277_v8  ;;  %v295_v16 = vmul.f32 %v722_v32, %v291_v9 }
  0xd7   :  { %v284_v21 = vadd.f32 -0.28449672, %v280_v11  ;;  %v314_v22 = vmul.f32 %v728_v13, %v294_v12 }
  0xd8   :  { %v285_v23 = vadd.f32 -0.28449672, %v281_v14  ;;  %v315_v24 = vmul.f32 %v730_v17, %v295_v16 }
  0xd9   :  { %v288_v25 = vmul.f32 %v724_v44, %v284_v21  ;;  %v318_v26 = vsub.f32 1.0, %v314_v22 }
  0xda   :  { %v289_v27 = vmul.f32 %v726_v48, %v285_v23  ;;  %v319_v28 = vsub.f32 1.0, %v315_v24 }
  0xdb   :  { %v292_v30 = vadd.f32 0.2548296, %v288_v25  ;;  %v326_v34 = vsub.f32 0.0, %v318_v26 }
  0xdc   :  { %v293_v31 = vadd.f32 0.2548296, %v289_v27  ;;  %v327_v36 = vsub.f32 0.0, %v319_v28 }
  0xdd   :  { %v296_v33 = vmul.f32 %v724_v44, %v292_v30  ;;  %v330_v40 = vsel %vm322_vm0, %v326_v34, %v318_v26 }
  0xde   :  { %v297_v29 = vmul.f32 %v726_v48, %v293_v31  ;;  %v331_v42 = vsel %vm323_vm1, %v327_v36, %v319_v28  ;;  %v334_v45 = vadd.f32 1.0, %v330_v40  ;;  %v238_v48 = vmul.f32 0.5, %v920_v0  ;;  %v90_v0 = vld [vmem:[%s965_s4] sm:$0x1] }
  0xdf   :  { %v316_v32 = vmul.f32 %v732_v35, %v296_v33  ;;  %v335_v47 = vadd.f32 1.0, %v331_v42  ;;  %v91_v20 = vunpack.c.l.bf16 %v90_v0 }
  0xe0   :  { %v317_v38 = vmul.f32 %v734_v37, %v297_v29  ;;  %v338_v53 = vmul.f32 %v334_v45, %v238_v48 }
  0xe1   :  { %v320_v39 = vsub.f32 1.0, %v316_v32  ;;  %v339_v19 = vmul.f32 %v335_v47, %v239_v4  ;;  %v92_v60 = vperm.slane %v91_v20, 0 }
  0xe2   :  { %v321_v41 = vsub.f32 1.0, %v317_v38 }
  0xe3   :  { %v328_v43 = vsub.f32 0.0, %v320_v39  ;;  %v93_v61 = vadd.f32 %v703_v2, %v92_v60  ;;  %v94_v1 = vadd.f32 %v704_v18, %v92_v60 }
  0xe4   :  { %v329_v44 = vsub.f32 0.0, %v321_v41 }
  0xe5   :  { %v332_v46 = vsel %vm324_vm2, %v328_v43, %v320_v39 }
  0xe6   :  { %v336_v49 = vadd.f32 1.0, %v332_v46  ;;  %v333_v50 = vsel %vm325_vm3, %v329_v44, %v321_v41 }
  0xe7   :  { %v337_v52 = vadd.f32 1.0, %v333_v50 }
  0xe8   :  { %v340_v54 = vmul.f32 %v336_v49, %v240_v3 }
  0xe9   :  { %v341_v55 = vmul.f32 %v337_v52, %v241_v51 }
  0xea   :  { %v344_v56 = vpack.c.bf16 %v340_v54, %v338_v53 }
  0xeb   :  { %v345_v57 = vpack.c.bf16 %v341_v55, %v339_v19 }
  0xec   :  { %482 = vmatmul.bf16.vlgmr.msra.gmra.mxu2 %v344_v56 }
  0xed   :  { %496 = vmatmul.bf16.vlgmr.msra.gmra.mxu3 %v345_v57 }
 0x16f   :  { %v483_v15 = vpop.f32.mrf.mxu2 }
 0x170   :  { %v497_v59 = vpop.f32.mrf.mxu3 }
 0x171   :  { %v498_v62 = vadd.f32 %v497_v59, %v483_v15 }
 0x173   :  { %v502_v7 = vadd.f32 %v498_v62, %v93_v61 }
 0x177   :  { %v485_v63 = vpop.f32.mrf.mxu2 }
 0x178   :  { %v499_v5 = vpop.f32.mrf.mxu3 }
 0x179   :  { %v500_v6 = vadd.f32 %v499_v5, %v485_v63 }
 0x17b   :  { %v503_v8 = vadd.f32 %v500_v6, %v94_v1 }
 0x17d   :  { %v708_v9 = vpack.c.bf16 %v503_v8, %v502_v7 }
 0x17f   :  { %709 = vst [vmem:[#allocation11] sm:$0xff] %v708_v9  }
 0x180   :  { %527 = dma.vmem_to_hbm [thread:$0]  %s520_s16, 128, %s522_s19, [#allocation5], %s867_s30, %s867_s30, %s868_s6  }
 0x181   :  { %861 = dma.done.wait [#allocation5], 128  }
 0x182   :  { %862 = vsyncadd [#allocation5], 4294967168 }
 0x183   :  { %532 = vsyncpa [#allocation4], 1 }
 0x184   :  { %533 = vsyncpa [#allocation7], 1 }
 0x185   :  { %534 = vsyncpa [#allocation10], 1 }
 0x186   :  { %535 = vsyncpa [#allocation5], 1 }

</bundles_post_ra>
